<compile_context>
chip_gen: v6e
topology: v6e:2x2x1
jax: 0.10.0
libtpu: 0.0.40
codegen_flags: <defaults>
</compile_context>

<pallas_src>
import functools

import jax
import jax.numpy as jnp
from jax.experimental import pallas as pl
from jax.experimental.pallas import tpu as pltpu


def _sigmoid(v):
    # sigmoid(v) == 0.5 * tanh(v / 2) + 0.5 : one EUP op, no divide.
    return 0.5 * jnp.tanh(0.5 * v) + 0.5


def lstm_kernel(xt_ref, w0_ref, b0_ref, *rest, num_layers, hidden, compute_dtype):
    H = hidden
    if num_layers > 1:
        wl_ref, bl_ref, o_ref = rest
    else:
        (o_ref,) = rest

    def cell(gates):
        # PyTorch gate layout along 4H (sublane axis): [i, f, g, o].
        # f is dropped because c0 == 0; all slices are sublane multiples of 8.
        i = _sigmoid(gates[0:H, :])
        g = jnp.tanh(gates[2 * H:3 * H, :])
        o = _sigmoid(gates[3 * H:4 * H, :])
        return o * jnp.tanh(i * g)                                   # (H, TB) f32

    # Layer 0: gates = W_ih @ x^T + (b_ih + b_hh); the recurrent term is 0.
    # x is fed in its native/compute dtype, MXU accumulates in f32.
    gates = jnp.dot(w0_ref[...], xt_ref[...],
                    preferred_element_type=jnp.float32) + b0_ref[...]  # (4H, TB)
    h = cell(gates)
    for l in range(num_layers - 1):                                    # static unroll over layers
        gates = jnp.dot(wl_ref[l], h.astype(compute_dtype),
                        preferred_element_type=jnp.float32) + bl_ref[l]
        h = cell(gates)
    o_ref[...] = h.astype(o_ref.dtype)


def _choose_batch_tile(Bp):
    """Bp is a multiple of 128.  Prefer a 256-row tile (MXU-friendly, ~32 vregs
    of f32 gates) but keep >=2 grid steps when possible so v7x can shard the
    batch axis across its two TensorCores."""
    if Bp % 256 == 0 and Bp // 256 >= 2:
        return 256
    return 128


def lstm_pallas(x, params, *, compute_dtype=None):
    """params: list (per layer) of (w_ih (4H,Din), w_hh (4H,H), b_ih (4H,), b_hh (4H,)).

    compute_dtype: dtype fed to the MXU (weights + activations).  Defaults to
    x.dtype; use jnp.bfloat16 on v6e/v7x at real model sizes to halve DMA bytes
    and double MXU throughput (gating stays f32 either way).
    """
    B, D = x.shape
    L = len(params)
    H = params[0][1].shape[1]
    cd = jnp.dtype(compute_dtype) if compute_dtype is not None else x.dtype

    # --- wrapper-side layout prep (semantics preserving) ---------------------
    # Weights stay in PyTorch's (4H, Din) layout (no transpose); biases are
    # pre-combined (h0 == 0 so W_hh contributes nothing) and kept in f32 since
    # they add straight into the f32 accumulator.
    w0 = params[0][0].astype(cd)                                              # (4H, D)
    b0 = (params[0][2] + params[0][3]).reshape(4 * H, 1).astype(jnp.float32)  # (4H, 1)

    # Pad the batch to a multiple of 128 so the batch (lane) axis is dense.
    # Choosing B as a multiple of 128 avoids the pad copy entirely.
    Bp = pl.cdiv(B, 128) * 128
    tb = _choose_batch_tile(Bp)
    xt = x.T.astype(cd)                                                       # (D, B)
    if Bp != B:
        xt = jnp.pad(xt, ((0, 0), (0, Bp - B)))

    args = [xt, w0, b0]
    in_specs = [
        pl.BlockSpec((D, tb), lambda b: (0, b)),          # batch tile of x^T
        pl.BlockSpec((4 * H, D), lambda b: (0, 0)),       # layer-0 weights (resident)
        pl.BlockSpec((4 * H, 1), lambda b: (0, 0)),       # layer-0 combined bias
    ]
    if L > 1:
        wl = jnp.stack([p[0].astype(cd) for p in params[1:]])                 # (L-1, 4H, H)
        bl = jnp.stack([(p[2] + p[3]).reshape(4 * H, 1).astype(jnp.float32)
                        for p in params[1:]])                                 # (L-1, 4H, 1)
        args += [wl, bl]
        in_specs += [
            pl.BlockSpec((L - 1, 4 * H, H), lambda b: (0, 0, 0)),
            pl.BlockSpec((L - 1, 4 * H, 1), lambda b: (0, 0, 0)),
        ]

    kernel = functools.partial(lstm_kernel, num_layers=L, hidden=H, compute_dtype=cd)
    out = pl.pallas_call(
        kernel,
        out_shape=jax.ShapeDtypeStruct((H, Bp), x.dtype),
        grid_spec=pltpu.PrefetchScalarGridSpec(
            num_scalar_prefetch=0,
            grid=(Bp // tb,),
            in_specs=in_specs,
            # lane-dense output: batch (multiple of 128) on lanes, H on sublanes
            out_specs=pl.BlockSpec((H, tb), lambda b: (0, b)),
        ),
        compiler_params=pltpu.CompilerParams(
            # batch tiles are independent -> v7x can shard them over its 2 TCs
            dimension_semantics=("parallel",)),
    )(*args)
    return out[:, :B].T                                                       # (B, H)


def lstm_reference(x, params):
    """Pure-JAX reference matching PyTorch nn.LSTM semantics (seq_len=1, zero init)."""
    B = x.shape[0]
    hp = x
    for (w_ih, w_hh, b_ih, b_hh) in params:
        H = w_hh.shape[1]
        h0 = jnp.zeros((B, H), jnp.float32)
        c0 = jnp.zeros((B, H), jnp.float32)
        gates = (jnp.dot(hp, w_ih.T, precision=jax.lax.Precision.HIGHEST)
                 + jnp.dot(h0, w_hh.T, precision=jax.lax.Precision.HIGHEST)
                 + b_ih + b_hh)
        i = jax.nn.sigmoid(gates[:, 0:H])
        f = jax.nn.sigmoid(gates[:, H:2 * H])
        g = jnp.tanh(gates[:, 2 * H:3 * H])
        o = jax.nn.sigmoid(gates[:, 3 * H:4 * H])
        c = f * c0 + i * g
        hp = o * jnp.tanh(c)
    return hp


if __name__ == "__main__":
    B, in_channel, out_channel, num_layers = 8, 32, 32, 2
    H = out_channel

    key = jax.random.PRNGKey(0)
    keys = jax.random.split(key, 1 + 4 * num_layers)
    x = jax.random.normal(keys[0], (B, in_channel), jnp.float32)

    params = []
    for l in range(num_layers):
        d_in = in_channel if l == 0 else H
        k = keys[1 + 4 * l: 1 + 4 * (l + 1)]
        w_ih = jax.random.normal(k[0], (4 * H, d_in), jnp.float32) * 0.1
        w_hh = jax.random.normal(k[1], (4 * H, H), jnp.float32) * 0.1
        b_ih = jax.random.normal(k[2], (4 * H,), jnp.float32) * 0.1
        b_hh = jax.random.normal(k[3], (4 * H,), jnp.float32) * 0.1
        params.append((w_ih, w_hh, b_ih, b_hh))

    out = jax.jit(lstm_pallas)(x, params)
    out = jax.block_until_ready(out)

    ref = lstm_reference(x, params)
    assert out.shape == (B, out_channel)
    err = jnp.max(jnp.abs(out - ref))
    assert jnp.allclose(out, ref, atol=1e-4, rtol=1e-4), f"max abs err {err}"

    print("KERNEL_OK")
</pallas_src>

<mosaic_0001>
module attributes {stable_mosaic.version = 11 : i64} {
  func.func @lstm_kernel(%arg0: i32, %arg1: memref<32x128xf32, #tpu.memory_space<vmem>>, %arg2: memref<128x32xf32, #tpu.memory_space<vmem>>, %arg3: memref<128x1xf32, #tpu.memory_space<vmem>>, %arg4: memref<1x128x32xf32, #tpu.memory_space<vmem>>, %arg5: memref<1x128x1xf32, #tpu.memory_space<vmem>>, %arg6: memref<32x128xf32, #tpu.memory_space<vmem>>) attributes {dimension_semantics = [#tpu.dimension_semantics<parallel>], iteration_bounds = array<i64: 1>, scalar_prefetch = 0 : i64, scratch_operands = 0 : i64, tpu.core_type = #tpu.core_type<tc>, window_params = [{transform_indices = @transform_0, window_bounds = array<i64: 32, 128>}, {pipeline_mode = #tpu.pipeline_mode<synchronous>, transform_indices = @transform_1, window_bounds = array<i64: 128, 32>}, {pipeline_mode = #tpu.pipeline_mode<synchronous>, transform_indices = @transform_2, window_bounds = array<i64: 128, 1>}, {pipeline_mode = #tpu.pipeline_mode<synchronous>, transform_indices = @transform_3, window_bounds = array<i64: 1, 128, 32>}, {pipeline_mode = #tpu.pipeline_mode<synchronous>, transform_indices = @transform_4, window_bounds = array<i64: 1, 128, 1>}, {transform_indices = @transform_5, window_bounds = array<i64: 32, 128>}]} {
    %c0 = arith.constant 0 : index
    %c0_0 = arith.constant 0 : index
    %0 = vector.load %arg2[%c0, %c0_0] : memref<128x32xf32, #tpu.memory_space<vmem>>, vector<128x32xf32>
    %c0_1 = arith.constant 0 : index
    %c0_2 = arith.constant 0 : index
    %1 = vector.load %arg1[%c0_1, %c0_2] : memref<32x128xf32, #tpu.memory_space<vmem>>, vector<32x128xf32>
    %cst = arith.constant dense<0.000000e+00> : vector<128x128xf32>
    %2 = tpu.matmul %0, %1, %cst {dimension_numbers = #tpu.dot_dimension_numbers<[1], [0], [0], [1], [0, 0, 1, 1], [], []>} : vector<128x32xf32>, vector<32x128xf32>, vector<128x128xf32> -> vector<128x128xf32>
    %c0_3 = arith.constant 0 : index
    %c0_4 = arith.constant 0 : index
    %3 = vector.load %arg3[%c0_3, %c0_4] : memref<128x1xf32, #tpu.memory_space<vmem>>, vector<128x1xf32>
    %4 = vector.broadcast %3 : vector<128x1xf32> to vector<128x128xf32>
    %5 = arith.addf %2, %4 : vector<128x128xf32>
    %6 = vector.extract_strided_slice %5 {offsets = [0, 0], sizes = [32, 128], strides = [1, 1]} : vector<128x128xf32> to vector<32x128xf32>
    %cst_5 = arith.constant 5.000000e-01 : f32
    %7 = vector.broadcast %cst_5 : f32 to vector<32x128xf32>
    %8 = arith.mulf %7, %6 : vector<32x128xf32>
    %9 = math.tanh %8 : vector<32x128xf32>
    %cst_6 = arith.constant 5.000000e-01 : f32
    %10 = vector.broadcast %cst_6 : f32 to vector<32x128xf32>
    %11 = arith.mulf %10, %9 : vector<32x128xf32>
    %cst_7 = arith.constant 5.000000e-01 : f32
    %12 = vector.broadcast %cst_7 : f32 to vector<32x128xf32>
    %13 = arith.addf %11, %12 : vector<32x128xf32>
    %14 = vector.extract_strided_slice %5 {offsets = [64, 0], sizes = [32, 128], strides = [1, 1]} : vector<128x128xf32> to vector<32x128xf32>
    %15 = math.tanh %14 : vector<32x128xf32>
    %16 = vector.extract_strided_slice %5 {offsets = [96, 0], sizes = [32, 128], strides = [1, 1]} : vector<128x128xf32> to vector<32x128xf32>
    %cst_8 = arith.constant 5.000000e-01 : f32
    %17 = vector.broadcast %cst_8 : f32 to vector<32x128xf32>
    %18 = arith.mulf %17, %16 : vector<32x128xf32>
    %19 = math.tanh %18 : vector<32x128xf32>
    %cst_9 = arith.constant 5.000000e-01 : f32
    %20 = vector.broadcast %cst_9 : f32 to vector<32x128xf32>
    %21 = arith.mulf %20, %19 : vector<32x128xf32>
    %cst_10 = arith.constant 5.000000e-01 : f32
    %22 = vector.broadcast %cst_10 : f32 to vector<32x128xf32>
    %23 = arith.addf %21, %22 : vector<32x128xf32>
    %24 = arith.mulf %13, %15 : vector<32x128xf32>
    %25 = math.tanh %24 : vector<32x128xf32>
    %26 = arith.mulf %23, %25 : vector<32x128xf32>
    %c0_11 = arith.constant 0 : index
    %c0_12 = arith.constant 0 : index
    %c0_13 = arith.constant 0 : index
    %27 = vector.load %arg4[%c0_11, %c0_12, %c0_13] : memref<1x128x32xf32, #tpu.memory_space<vmem>>, vector<1x128x32xf32>
    %28 = vector.shape_cast %27 : vector<1x128x32xf32> to vector<128x32xf32>
    %cst_14 = arith.constant dense<0.000000e+00> : vector<128x128xf32>
    %29 = tpu.matmul %28, %26, %cst_14 {dimension_numbers = #tpu.dot_dimension_numbers<[1], [0], [0], [1], [0, 0, 1, 1], [], []>} : vector<128x32xf32>, vector<32x128xf32>, vector<128x128xf32> -> vector<128x128xf32>
    %c0_15 = arith.constant 0 : index
    %c0_16 = arith.constant 0 : index
    %c0_17 = arith.constant 0 : index
    %30 = vector.load %arg5[%c0_15, %c0_16, %c0_17] : memref<1x128x1xf32, #tpu.memory_space<vmem>>, vector<1x128x1xf32>
    %31 = vector.shape_cast %30 : vector<1x128x1xf32> to vector<128x1xf32>
    %32 = vector.broadcast %31 : vector<128x1xf32> to vector<128x128xf32>
    %33 = arith.addf %29, %32 : vector<128x128xf32>
    %34 = vector.extract_strided_slice %33 {offsets = [0, 0], sizes = [32, 128], strides = [1, 1]} : vector<128x128xf32> to vector<32x128xf32>
    %cst_18 = arith.constant 5.000000e-01 : f32
    %35 = vector.broadcast %cst_18 : f32 to vector<32x128xf32>
    %36 = arith.mulf %35, %34 : vector<32x128xf32>
    %37 = math.tanh %36 : vector<32x128xf32>
    %cst_19 = arith.constant 5.000000e-01 : f32
    %38 = vector.broadcast %cst_19 : f32 to vector<32x128xf32>
    %39 = arith.mulf %38, %37 : vector<32x128xf32>
    %cst_20 = arith.constant 5.000000e-01 : f32
    %40 = vector.broadcast %cst_20 : f32 to vector<32x128xf32>
    %41 = arith.addf %39, %40 : vector<32x128xf32>
    %42 = vector.extract_strided_slice %33 {offsets = [64, 0], sizes = [32, 128], strides = [1, 1]} : vector<128x128xf32> to vector<32x128xf32>
    %43 = math.tanh %42 : vector<32x128xf32>
    %44 = vector.extract_strided_slice %33 {offsets = [96, 0], sizes = [32, 128], strides = [1, 1]} : vector<128x128xf32> to vector<32x128xf32>
    %cst_21 = arith.constant 5.000000e-01 : f32
    %45 = vector.broadcast %cst_21 : f32 to vector<32x128xf32>
    %46 = arith.mulf %45, %44 : vector<32x128xf32>
    %47 = math.tanh %46 : vector<32x128xf32>
    %cst_22 = arith.constant 5.000000e-01 : f32
    %48 = vector.broadcast %cst_22 : f32 to vector<32x128xf32>
    %49 = arith.mulf %48, %47 : vector<32x128xf32>
    %cst_23 = arith.constant 5.000000e-01 : f32
    %50 = vector.broadcast %cst_23 : f32 to vector<32x128xf32>
    %51 = arith.addf %49, %50 : vector<32x128xf32>
    %52 = arith.mulf %41, %43 : vector<32x128xf32>
    %53 = math.tanh %52 : vector<32x128xf32>
    %54 = arith.mulf %51, %53 : vector<32x128xf32>
    %c0_24 = arith.constant 0 : index
    %c0_25 = arith.constant 0 : index
    %55 = vector.load %arg6[%c0_24, %c0_25] : memref<32x128xf32, #tpu.memory_space<vmem>>, vector<32x128xf32>
    tpu.vector_store %arg6[%c0_24, %c0_25], %54 {strides = array<i32>} : memref<32x128xf32, #tpu.memory_space<vmem>>, vector<32x128xf32>,
    return
  }
  func.func @transform_0(%arg0: i32) -> (i32, i32) {
    %c0_i32 = arith.constant 0 : i32
    %c0_i32_0 = arith.constant 0 : i32
    return %c0_i32, %arg0 : i32, i32
  }
  func.func @transform_1(%arg0: i32) -> (i32, i32) {
    %c0_i32 = arith.constant 0 : i32
    %c0_i32_0 = arith.constant 0 : i32
    %c0_i32_1 = arith.constant 0 : i32
    return %c0_i32, %c0_i32_0 : i32, i32
  }
  func.func @transform_2(%arg0: i32) -> (i32, i32) {
    %c0_i32 = arith.constant 0 : i32
    %c0_i32_0 = arith.constant 0 : i32
    %c0_i32_1 = arith.constant 0 : i32
    return %c0_i32, %c0_i32_0 : i32, i32
  }
  func.func @transform_3(%arg0: i32) -> (i32, i32, i32) {
    %c0_i32 = arith.constant 0 : i32
    %c0_i32_0 = arith.constant 0 : i32
    %c0_i32_1 = arith.constant 0 : i32
    %c0_i32_2 = arith.constant 0 : i32
    return %c0_i32, %c0_i32_0, %c0_i32_1 : i32, i32, i32
  }
  func.func @transform_4(%arg0: i32) -> (i32, i32, i32) {
    %c0_i32 = arith.constant 0 : i32
    %c0_i32_0 = arith.constant 0 : i32
    %c0_i32_1 = arith.constant 0 : i32
    %c0_i32_2 = arith.constant 0 : i32
    return %c0_i32, %c0_i32_0, %c0_i32_1 : i32, i32, i32
  }
  func.func @transform_5(%arg0: i32) -> (i32, i32) {
    %c0_i32 = arith.constant 0 : i32
    %c0_i32_0 = arith.constant 0 : i32
    return %c0_i32, %arg0 : i32, i32
  }
}

</mosaic_0001>

<bundles_post_ra>
// kernel: lstm_pallas.1
= control target key start
LH: loop header
LB: loop body
LE: loop exit
PB: predicated region body
PF: predicated region fallthrough
CT: control target
= control target key end

     0   :  { %vm132_vm0 = vcmask 261120   ;;  %v926_v2 = vmov 0   ;;  %s1181_s0 = inlined_call_operand.vmem [shape: f32[32,128], index: 0, kind: input, shape index: {}]   ;;  %s1182_s1 = inlined_call_operand.vmem [shape: f32[128,32], index: 1, kind: input, shape index: {}]   ;;  %s1183_s2 = inlined_call_operand.vmem [shape: f32[128,1], index: 2, kind: input, shape index: {}]   ;;  %s1184_s4 = inlined_call_operand.vmem [shape: f32[1,128,1], index: 4, kind: input, shape index: {}]   ;;  %s1185_s3 = inlined_call_operand.vmem [shape: f32[1,128,32], index: 3, kind: input, shape index: {}]   ;;  %s1186_s5 = inlined_call_operand.vmem [shape: f32[32,128], index: 5, kind: output, shape index: {}]  }
   0x1   :  { %v39_v0 = vld [vmem:[%s1181_s0 + $0x18] sm:$0xff]  ;;  %v38_v1 = vld [vmem:[%s1181_s0 + $0x10] sm:$0xff]  ;;  %860 = vset.pattern.permute.xlu0 %v926_v2  ;;  %861 = vset.pattern.permute.xlu1 %v926_v2  ;;  %v20_v3 = vld [vmem:[%s1182_s1] sm:$0xff] }
   0x2   :  { %795 = vmatprep.subr.mxu0 %v39_v0  ;;  %v37_v4 = vld [vmem:[%s1181_s0 + $0x8] sm:$0xff]  ;;  %803 = vmatprep.mubr.msk.f32.mxu0 %vm132_vm0, %v20_v3  ;;  %v36_v5 = vld [vmem:[%s1181_s0] sm:$0xff]  ;;  %v43_v7 = vld [vmem:[%s1183_s2 + $0x18] sm:$0xff] }
   0x3   :  { %796 = vmatpush3.msra.mxu0 %v39_v0  ;;  %v21_v6 = vld [vmem:[%s1182_s1 + $0x8] sm:$0xff]  ;;  %v22_v8 = vld [vmem:[%s1182_s1 + $0x10] sm:$0xff]  ;;  %73 = vperm.xlu0 %860, %v43_v7   ;;  %v40_v11 = vld [vmem:[%s1183_s2] sm:$0xff] }
   0x4   :  { %797 = vmatprep.subr.mxu0 %v38_v1  ;;  %v41_v9 = vld [vmem:[%s1183_s2 + $0x8] sm:$0xff]  ;;  %v42_v10 = vld [vmem:[%s1183_s2 + $0x10] sm:$0xff]  ;;  %v23_v12 = vld [vmem:[%s1182_s1 + $0x18] sm:$0xff] }
   0x5   :  { %798 = vmatpush3.msra.mxu0 %v38_v1  ;;  %63 = vperm.xlu1 %861, %v41_v9   ;;  %v24_v13 = vld [vmem:[%s1182_s1 + $0x20] sm:$0xff]  ;;  %v51_v14 = vld [vmem:[%s1183_s2 + $0x58] sm:$0xff]  ;;  %v50_v15 = vld [vmem:[%s1183_s2 + $0x50] sm:$0xff] }
   0x6   :  { %799 = vmatprep.subr.mxu0 %v37_v4  ;;  %v25_v16 = vld [vmem:[%s1182_s1 + $0x28] sm:$0xff]  ;;  %v26_v17 = vld [vmem:[%s1182_s1 + $0x30] sm:$0xff]  ;;  %v48_v19 = vld [vmem:[%s1183_s2 + $0x40] sm:$0xff] }
   0x7   :  { %800 = vmatpush3.msra.mxu0 %v37_v4  ;;  %68 = vperm.xlu0 %860, %v42_v10   ;;  %v49_v18 = vld [vmem:[%s1183_s2 + $0x48] sm:$0xff]  ;;  %v27_v20 = vld [vmem:[%s1182_s1 + $0x38] sm:$0xff]  ;;  %v28_v21 = vld [vmem:[%s1182_s1 + $0x40] sm:$0xff] }
   0x8   :  { %801 = vmatprep.subr.mxu0 %v36_v5  ;;  %v55_v22 = vld [vmem:[%s1183_s2 + $0x78] sm:$0xff]  ;;  %v54_v23 = vld [vmem:[%s1183_s2 + $0x70] sm:$0xff]  ;;  %v29_v24 = vld [vmem:[%s1182_s1 + $0x48] sm:$0xff] }
   0x9   :  { %802 = vmatpush3.msra.mxu0 %v36_v5  ;;  %58 = vperm.xlu1 %861, %v40_v11   ;;  %v30_v25 = vld [vmem:[%s1182_s1 + $0x50] sm:$0xff]  ;;  %v53_v26 = vld [vmem:[%s1183_s2 + $0x68] sm:$0xff]  ;;  %v52_v27 = vld [vmem:[%s1183_s2 + $0x60] sm:$0xff] }
   0xa   :  { %804 = vmatmul.mubr.msk.f32.vlgmr.msra.gmra.mxu0 %vm132_vm0, %v21_v6  ;;  %v31_v28 = vld [vmem:[%s1182_s1 + $0x58] sm:$0xff]  ;;  %v32_v29 = vld [vmem:[%s1182_s1 + $0x60] sm:$0xff]  ;;  %v387_v31 = vld [vmem:[%s1184_s4 + $0x8] sm:$0xff] }
   0xb   :  { %806 = vmatprep.mubr.msk.f32.mxu0 %vm132_vm0, %v22_v8  ;;  %109 = vperm.xlu0 %860, %v51_v14   ;;  %v386_v30 = vld [vmem:[%s1184_s4] sm:$0xff]  ;;  %v33_v32 = vld [vmem:[%s1182_s1 + $0x68] sm:$0xff]  ;;  %v34_v33 = vld [vmem:[%s1182_s1 + $0x70] sm:$0xff] }
   0xc   :  { %v388_v34 = vld [vmem:[%s1184_s4 + $0x10] sm:$0xff]  ;;  %v389_v35 = vld [vmem:[%s1184_s4 + $0x18] sm:$0xff]  ;;  %v394_v37 = vld [vmem:[%s1184_s4 + $0x40] sm:$0xff] }
   0xd   :  { %104 = vperm.xlu1 %861, %v50_v15   ;;  %v35_v36 = vld [vmem:[%s1182_s1 + $0x78] sm:$0xff]  ;;  %v395_v38 = vld [vmem:[%s1184_s4 + $0x48] sm:$0xff]  ;;  %v396_v39 = vld [vmem:[%s1184_s4 + $0x50] sm:$0xff] }
   0xe   :  { %807 = vmatmul.mubr.msk.f32.gmra.mxu0 %vm132_vm0, %v23_v12  ;;  %v397_v40 = vld [vmem:[%s1184_s4 + $0x58] sm:$0xff]  ;;  %v398_v41 = vld [vmem:[%s1184_s4 + $0x60] sm:$0xff]  ;;  %v399_v42 = vld [vmem:[%s1184_s4 + $0x68] sm:$0xff] }
   0xf   :  { %809 = vmatprep.mubr.msk.f32.mxu0 %vm132_vm0, %v24_v13  ;;  %99 = vperm.xlu0 %860, %v49_v18   ;;  %v400_v43 = vld [vmem:[%s1184_s4 + $0x70] sm:$0xff]  ;;  %v401_v44 = vld [vmem:[%s1184_s4 + $0x78] sm:$0xff]  ;;  %v370_v45 = vld [vmem:[%s1185_s3] sm:$0xff] }
  0x10   :  { %835 = vmatprep.mubr.msk.f32.mxu1 %vm132_vm0, %v370_v45 }
  0x11   :  { %94 = vperm.xlu1 %861, %v48_v19  }
  0x12   :  { %810 = vmatmul.mubr.msk.f32.gmra.mxu0 %vm132_vm0, %v25_v16 }
  0x13   :  { %812 = vmatprep.mubr.msk.f32.mxu0 %vm132_vm0, %v26_v17  ;;  %129 = vperm.xlu0 %860, %v55_v22  }
  0x15   :  { %124 = vperm.xlu1 %861, %v54_v23  }
  0x16   :  { %813 = vmatmul.mubr.msk.f32.gmra.mxu0 %vm132_vm0, %v27_v20 }
  0x17   :  { %815 = vmatprep.mubr.msk.f32.mxu0 %vm132_vm0, %v28_v21  ;;  %119 = vperm.xlu0 %860, %v53_v26  }
  0x19   :  { %114 = vperm.xlu1 %861, %v52_v27  }
  0x1a   :  { %816 = vmatmul.mubr.msk.f32.gmra.mxu0 %vm132_vm0, %v29_v24 }
  0x1b   :  { %818 = vmatprep.mubr.msk.f32.mxu0 %vm132_vm0, %v30_v25  ;;  %404 = vperm.xlu0 %860, %v386_v30  }
  0x1d   :  { %409 = vperm.xlu1 %861, %v387_v31  }
  0x1e   :  { %819 = vmatmul.mubr.msk.f32.gmra.mxu0 %vm132_vm0, %v31_v28 }
  0x1f   :  { %821 = vmatprep.mubr.msk.f32.mxu0 %vm132_vm0, %v32_v29  ;;  %414 = vperm.xlu0 %860, %v388_v34  }
  0x21   :  { %419 = vperm.xlu1 %861, %v389_v35  }
  0x22   :  { %822 = vmatmul.mubr.msk.f32.gmra.mxu0 %vm132_vm0, %v33_v32 }
  0x23   :  { %824 = vmatprep.mubr.msk.f32.mxu0 %vm132_vm0, %v34_v33  ;;  %440 = vperm.xlu0 %860, %v394_v37  }
  0x25   :  { %445 = vperm.xlu1 %861, %v395_v38  }
  0x26   :  { %825 = vmatmul.mubr.msk.f32.gmra.mxu0 %vm132_vm0, %v35_v36 }
  0x27   :  { %450 = vperm.xlu0 %860, %v396_v39  }
  0x29   :  { %455 = vperm.xlu1 %861, %v397_v40  }
  0x2b   :  { %460 = vperm.xlu0 %860, %v398_v41  }
  0x2d   :  { %465 = vperm.xlu1 %861, %v399_v42  }
  0x2f   :  { %470 = vperm.xlu0 %860, %v400_v43  }
  0x31   :  { %475 = vperm.xlu1 %861, %v401_v44  }
  0x7e   :  { %v74_v46 = vpop.permute.xlu0 %73 }
  0x80   :  { %v64_v47 = vpop.permute.xlu1 %63 }
  0x82   :  { %v69_v49 = vpop.permute.xlu0 %68 }
  0x84   :  { %v59_v51 = vpop.permute.xlu1 %58 }
  0x86   :  { %v110_v56 = vpop.permute.xlu0 %109 }
  0x88   :  { %v105_v60 = vpop.permute.xlu1 %104 }
  0x8a   :  { %v100_v3 = vpop.permute.xlu0 %99 }
  0x8c   :  { %v95_v5 = vpop.permute.xlu1 %94 }
  0x8e   :  { %v130_v10 = vpop.permute.xlu0 %129 }
  0x90   :  { %v125_v13 = vpop.permute.xlu1 %124 }
  0x92   :  { %v120_v17 = vpop.permute.xlu0 %119 }
  0x94   :  { %v115_v22 = vpop.permute.xlu1 %114 }
  0xca   :  { %v805_v48 = vpop.f32.mrf.mxu0 }
  0xcb   :  { %v253_v53 = vadd.f32 %v805_v48, %v64_v47 }
  0xcc   :  { %v247_v50 = vpop.f32.mrf.mxu0 }
  0xcd   :  { %v248_v57 = vadd.f32 %v247_v50, %v59_v51  ;;  %v323_v61 = vmul.f32 0.5, %v253_v53 }
  0xce   :  { %v808_v52 = vpop.f32.mrf.mxu0 }
  0xcf   :  { %v263_v55 = vadd.f32 %v808_v52, %v74_v46  ;;  %v322_v0 = vmul.f32 0.5, %v248_v57  ;;  %862 = vtanh.f32 %v323_v61 }
  0xd0   :  { %v257_v54 = vpop.f32.mrf.mxu0 }
  0xd1   :  { %v258_v59 = vadd.f32 %v257_v54, %v69_v49  ;;  %v325_v63 = vmul.f32 0.5, %v263_v55 }
  0xd2   :  { %v811_v58 = vpop.f32.mrf.mxu0 }
  0xd3   :  { %v324_v2 = vmul.f32 0.5, %v258_v59  ;;  %864 = vtanh.f32 %v325_v63 }
  0xd4   :  { %v267_v62 = vpop.f32.mrf.mxu0  ;;  %866 = vtanh.f32 %v322_v0 }
  0xd5   :  { %868 = vtanh.f32 %v324_v2 }
  0xd6   :  { %v814_v1 = vpop.f32.mrf.mxu0 }
  0xd8   :  { %v275_v4 = vpop.f32.mrf.mxu0 }
  0xda   :  { %v817_v6 = vpop.f32.mrf.mxu0 }
  0xdb   :  { %v289_v7 = vadd.f32 %v817_v6, %v100_v3  ;;  %v371_v6 = vld [vmem:[%s1185_s3 + $0x8] sm:$0xff] }
  0xdc   :  { %v283_v8 = vpop.f32.mrf.mxu0  ;;  %v863_v19 = vpop.eup %862 }
  0xdd   :  { %v284_v9 = vadd.f32 %v283_v8, %v95_v5  ;;  %870 = vtanh.f32 %v289_v7  ;;  %v331_v28 = vmul.f32 0.5, %v863_v19  ;;  %v372_v7 = vld [vmem:[%s1185_s3 + $0x10] sm:$0xff]  ;;  %v373_v8 = vld [vmem:[%s1185_s3 + $0x18] sm:$0xff] }
  0xde   :  { %v820_v11 = vpop.f32.mrf.mxu0  ;;  %v384_v19 = vld [vmem:[%s1185_s3 + $0x70] sm:$0xff] }
  0xdf   :  { %v299_v12 = vadd.f32 %v820_v11, %v110_v56  ;;  %872 = vtanh.f32 %v284_v9  ;;  %v335_v39 = vadd.f32 0.5, %v331_v28  ;;  %v374_v9 = vld [vmem:[%s1185_s3 + $0x20] sm:$0xff]  ;;  %v376_v11 = vld [vmem:[%s1185_s3 + $0x30] sm:$0xff] }
  0xe0   :  { %v293_v14 = vpop.f32.mrf.mxu0  ;;  %v865_v21 = vpop.eup %864 }
  0xe1   :  { %874 = vtanh.f32 %v299_v12  ;;  %v294_v15 = vadd.f32 %v293_v14, %v105_v60  ;;  %v867_v24 = vpop.eup %866  ;;  %v333_v30 = vmul.f32 0.5, %v865_v21  ;;  %v377_v12 = vld [vmem:[%s1185_s3 + $0x38] sm:$0xff]  ;;  %v379_v14 = vld [vmem:[%s1185_s3 + $0x48] sm:$0xff]  ;;  %v410_v21 = vpop.permute.xlu1 %409 }
  0xe2   :  { %v823_v16 = vpop.f32.mrf.mxu0  ;;  %v869_v27 = vpop.eup %868  ;;  %v330_v34 = vmul.f32 0.5, %v867_v24 }
  0xe3   :  { %876 = vtanh.f32 %v294_v15  ;;  %v309_v20 = vadd.f32 %v823_v16, %v120_v17  ;;  %v332_v36 = vmul.f32 0.5, %v869_v27  ;;  %v337_v41 = vadd.f32 0.5, %v333_v30  ;;  %v380_v15 = vld [vmem:[%s1185_s3 + $0x50] sm:$0xff]  ;;  %v381_v16 = vld [vmem:[%s1185_s3 + $0x58] sm:$0xff]  ;;  %v382_v17 = vld [vmem:[%s1185_s3 + $0x60] sm:$0xff] }
  0xe4   :  { %v303_v18 = vpop.f32.mrf.mxu0  ;;  %v334_v44 = vadd.f32 0.5, %v330_v34 }
  0xe5   :  { %v304_v25 = vadd.f32 %v303_v18, %v115_v22  ;;  %v343_v31 = vmul.f32 0.5, %v309_v20  ;;  %v336_v45 = vadd.f32 0.5, %v332_v36  ;;  %v383_v18 = vld [vmem:[%s1185_s3 + $0x68] sm:$0xff]  ;;  %v385_v20 = vld [vmem:[%s1185_s3 + $0x78] sm:$0xff]  ;;  %v405_v22 = vpop.permute.xlu0 %404 }
  0xe6   :  { %v826_v23 = vpop.f32.mrf.mxu0 }
  0xe7   :  { %v319_v26 = vadd.f32 %v826_v23, %v130_v10  ;;  %v342_v37 = vmul.f32 0.5, %v304_v25  ;;  %v375_v10 = vld [vmem:[%s1185_s3 + $0x28] sm:$0xff] }
  0xe8   :  { %v313_v29 = vpop.f32.mrf.mxu0 }
  0xe9   :  { %v345_v32 = vmul.f32 0.5, %v319_v26  ;;  %v314_v33 = vadd.f32 %v313_v29, %v125_v13  ;;  %v378_v13 = vld [vmem:[%s1185_s3 + $0x40] sm:$0xff]  ;;  %v420_v26 = vpop.permute.xlu1 %419  ;;  %v415_v29 = vpop.permute.xlu0 %414 }
  0xea   :  { %v871_v35 = vpop.eup %870 }
  0xeb   :  { %878 = vtanh.f32 %v345_v32  ;;  %v344_v38 = vmul.f32 0.5, %v314_v33  ;;  %v359_v43 = vmul.f32 %v871_v35, %v335_v39 }
  0xec   :  { %v873_v40 = vpop.eup %872  ;;  %880 = vtanh.f32 %v343_v31 }
  0xed   :  { %882 = vtanh.f32 %v344_v38  ;;  %v358_v48 = vmul.f32 %v873_v40, %v334_v44  ;;  %v446_v36 = vpop.permute.xlu1 %445  ;;  %v441_v39 = vpop.permute.xlu0 %440 }
  0xee   :  { %v875_v42 = vpop.eup %874  ;;  %884 = vtanh.f32 %v342_v37 }
  0xef   :  { %v361_v46 = vmul.f32 %v875_v42, %v337_v41 }
  0xf0   :  { %v877_v47 = vpop.eup %876 }
  0xf1   :  { %v360_v49 = vmul.f32 %v877_v47, %v336_v45  ;;  %886 = vtanh.f32 %v361_v46  ;;  %v451_v46 = vpop.permute.xlu0 %450 }
  0xf2   :  { %888 = vtanh.f32 %v359_v43  ;;  %v456_v43 = vpop.permute.xlu1 %455 }
  0xf3   :  { %890 = vtanh.f32 %v360_v49 }
  0xf4   :  { %892 = vtanh.f32 %v358_v48 }
  0xf8   :  { %v879_v50 = vpop.eup %878 }
  0xf9   :  { %v353_v51 = vmul.f32 0.5, %v879_v50  ;;  %v881_v52 = vpop.eup %880 }
  0xfa   :  { %v883_v53 = vpop.eup %882  ;;  %v351_v56 = vmul.f32 0.5, %v881_v52 }
  0xfb   :  { %v885_v54 = vpop.eup %884  ;;  %v352_v55 = vmul.f32 0.5, %v883_v53  ;;  %v357_v57 = vadd.f32 0.5, %v353_v51  ;;  %v466_v51 = vpop.permute.xlu1 %465 }
  0xfc   :  { %v350_v60 = vmul.f32 0.5, %v885_v54  ;;  %v355_v0 = vadd.f32 0.5, %v351_v56 }
  0xfd   :  { %v356_v61 = vadd.f32 0.5, %v352_v55  ;;  %v461_v55 = vpop.permute.xlu0 %460 }
  0xfe   :  { %v887_v58 = vpop.eup %886  ;;  %v354_v3 = vadd.f32 0.5, %v350_v60 }
  0xff   :  { %v889_v59 = vpop.eup %888  ;;  %v369_v62 = vmul.f32 %v887_v58, %v357_v57 }
 0x100   :  { %v891_v63 = vpop.eup %890  ;;  %v367_v4 = vmul.f32 %v889_v59, %v355_v0  ;;  %v476_v0 = vpop.permute.xlu1 %475 }
 0x101   :  { %827 = vmatprep.subr.mxu1 %v369_v62  ;;  %v368_v1 = vmul.f32 %v891_v63, %v356_v61  ;;  %v893_v2 = vpop.eup %892 }
 0x102   :  { %828 = vmatpush3.msra.mxu1 %v369_v62  ;;  %v366_v5 = vmul.f32 %v893_v2, %v354_v3 }
 0x103   :  { %829 = vmatprep.subr.mxu1 %v368_v1 }
 0x104   :  { %830 = vmatpush3.msra.mxu1 %v368_v1 }
 0x105   :  { %831 = vmatprep.subr.mxu1 %v367_v4 }
 0x106   :  { %832 = vmatpush3.msra.mxu1 %v367_v4 }
 0x107   :  { %833 = vmatprep.subr.mxu1 %v366_v5 }
 0x108   :  { %834 = vmatpush3.msra.mxu1 %v366_v5 }
 0x109   :  { %836 = vmatmul.mubr.msk.f32.vlgmr.msra.gmra.mxu1 %vm132_vm0, %v371_v6  ;;  %v471_v6 = vpop.permute.xlu0 %470 }
 0x10a   :  { %838 = vmatprep.mubr.msk.f32.mxu1 %vm132_vm0, %v372_v7 }
 0x10d   :  { %839 = vmatmul.mubr.msk.f32.gmra.mxu1 %vm132_vm0, %v373_v8 }
 0x10e   :  { %841 = vmatprep.mubr.msk.f32.mxu1 %vm132_vm0, %v374_v9 }
 0x111   :  { %842 = vmatmul.mubr.msk.f32.gmra.mxu1 %vm132_vm0, %v375_v10 }
 0x112   :  { %844 = vmatprep.mubr.msk.f32.mxu1 %vm132_vm0, %v376_v11 }
 0x115   :  { %845 = vmatmul.mubr.msk.f32.gmra.mxu1 %vm132_vm0, %v377_v12 }
 0x116   :  { %847 = vmatprep.mubr.msk.f32.mxu1 %vm132_vm0, %v378_v13 }
 0x119   :  { %848 = vmatmul.mubr.msk.f32.gmra.mxu1 %vm132_vm0, %v379_v14 }
 0x11a   :  { %850 = vmatprep.mubr.msk.f32.mxu1 %vm132_vm0, %v380_v15 }
 0x11d   :  { %851 = vmatmul.mubr.msk.f32.gmra.mxu1 %vm132_vm0, %v381_v16 }
 0x11e   :  { %853 = vmatprep.mubr.msk.f32.mxu1 %vm132_vm0, %v382_v17 }
 0x121   :  { %854 = vmatmul.mubr.msk.f32.gmra.mxu1 %vm132_vm0, %v383_v18 }
 0x122   :  { %856 = vmatprep.mubr.msk.f32.mxu1 %vm132_vm0, %v384_v19 }
 0x125   :  { %857 = vmatmul.mubr.msk.f32.gmra.mxu1 %vm132_vm0, %v385_v20 }
 0x1c9   :  { %v837_v23 = vpop.f32.mrf.mxu1 }
 0x1ca   :  { %v598_v24 = vadd.f32 %v837_v23, %v410_v21 }
 0x1cb   :  { %v592_v25 = vpop.f32.mrf.mxu1 }
 0x1cc   :  { %v593_v27 = vadd.f32 %v592_v25, %v405_v22  ;;  %v668_v30 = vmul.f32 0.5, %v598_v24 }
 0x1cd   :  { %v840_v28 = vpop.f32.mrf.mxu1 }
 0x1ce   :  { %v608_v32 = vadd.f32 %v840_v28, %v420_v26  ;;  %v667_v33 = vmul.f32 0.5, %v593_v27  ;;  %894 = vtanh.f32 %v668_v30 }
 0x1cf   :  { %v602_v31 = vpop.f32.mrf.mxu1 }
 0x1d0   :  { %v603_v35 = vadd.f32 %v602_v31, %v415_v29  ;;  %v670_v38 = vmul.f32 0.5, %v608_v32  ;;  %896 = vtanh.f32 %v667_v33 }
 0x1d1   :  { %v843_v34 = vpop.f32.mrf.mxu1 }
 0x1d2   :  { %v669_v41 = vmul.f32 0.5, %v603_v35  ;;  %898 = vtanh.f32 %v670_v38 }
 0x1d3   :  { %v612_v37 = vpop.f32.mrf.mxu1 }
 0x1d4   :  { %900 = vtanh.f32 %v669_v41 }
 0x1d5   :  { %v846_v40 = vpop.f32.mrf.mxu1 }
 0x1d7   :  { %v620_v42 = vpop.f32.mrf.mxu1 }
 0x1d9   :  { %v849_v44 = vpop.f32.mrf.mxu1 }
 0x1da   :  { %v634_v45 = vadd.f32 %v849_v44, %v446_v36 }
 0x1db   :  { %v628_v47 = vpop.f32.mrf.mxu1  ;;  %v895_v53 = vpop.eup %894 }
 0x1dc   :  { %902 = vtanh.f32 %v634_v45  ;;  %v629_v48 = vadd.f32 %v628_v47, %v441_v39  ;;  %v676_v59 = vmul.f32 0.5, %v895_v53 }
 0x1dd   :  { %v852_v49 = vpop.f32.mrf.mxu1  ;;  %v897_v57 = vpop.eup %896 }
 0x1de   :  { %904 = vtanh.f32 %v629_v48  ;;  %v644_v50 = vadd.f32 %v852_v49, %v456_v43  ;;  %v675_v1 = vmul.f32 0.5, %v897_v57  ;;  %v680_v7 = vadd.f32 0.5, %v676_v59 }
 0x1df   :  { %v638_v52 = vpop.f32.mrf.mxu1  ;;  %v899_v63 = vpop.eup %898 }
 0x1e0   :  { %906 = vtanh.f32 %v644_v50  ;;  %v639_v54 = vadd.f32 %v638_v52, %v451_v46  ;;  %v678_v9 = vmul.f32 0.5, %v899_v63  ;;  %v679_v13 = vadd.f32 0.5, %v675_v1 }
 0x1e1   :  { %v855_v56 = vpop.f32.mrf.mxu1  ;;  %v901_v5 = vpop.eup %900 }
 0x1e2   :  { %908 = vtanh.f32 %v639_v54  ;;  %v654_v58 = vadd.f32 %v855_v56, %v466_v51  ;;  %v677_v14 = vmul.f32 0.5, %v901_v5  ;;  %v682_v18 = vadd.f32 0.5, %v678_v9 }
 0x1e3   :  { %v648_v60 = vpop.f32.mrf.mxu1 }
 0x1e4   :  { %v688_v61 = vmul.f32 0.5, %v654_v58  ;;  %v649_v62 = vadd.f32 %v648_v60, %v461_v55  ;;  %v681_v21 = vadd.f32 0.5, %v677_v14 }
 0x1e5   :  { %v858_v2 = vpop.f32.mrf.mxu1 }
 0x1e6   :  { %910 = vtanh.f32 %v688_v61  ;;  %v687_v3 = vmul.f32 0.5, %v649_v62  ;;  %v664_v4 = vadd.f32 %v858_v2, %v476_v0 }
 0x1e7   :  { %v658_v8 = vpop.f32.mrf.mxu1 }
 0x1e8   :  { %912 = vtanh.f32 %v687_v3  ;;  %v690_v10 = vmul.f32 0.5, %v664_v4  ;;  %v659_v11 = vadd.f32 %v658_v8, %v471_v6 }
 0x1e9   :  { %v903_v12 = vpop.eup %902 }
 0x1ea   :  { %v704_v15 = vmul.f32 %v903_v12, %v680_v7  ;;  %914 = vtanh.f32 %v690_v10  ;;  %v689_v16 = vmul.f32 0.5, %v659_v11 }
 0x1eb   :  { %v905_v17 = vpop.eup %904 }
 0x1ec   :  { %916 = vtanh.f32 %v704_v15  ;;  %v703_v19 = vmul.f32 %v905_v17, %v679_v13 }
 0x1ed   :  { %v907_v20 = vpop.eup %906  ;;  %918 = vtanh.f32 %v689_v16 }
 0x1ee   :  { %920 = vtanh.f32 %v703_v19  ;;  %v706_v22 = vmul.f32 %v907_v20, %v682_v18 }
 0x1ef   :  { %v909_v23 = vpop.eup %908 }
 0x1f0   :  { %922 = vtanh.f32 %v706_v22  ;;  %v705_v24 = vmul.f32 %v909_v23, %v681_v21 }
 0x1f2   :  { %924 = vtanh.f32 %v705_v24 }
 0x1f3   :  { %v911_v25 = vpop.eup %910 }
 0x1f4   :  { %v696_v26 = vmul.f32 0.5, %v911_v25 }
 0x1f5   :  { %v913_v27 = vpop.eup %912 }
 0x1f6   :  { %v695_v28 = vmul.f32 0.5, %v913_v27  ;;  %v700_v30 = vadd.f32 0.5, %v696_v26 }
 0x1f7   :  { %v915_v29 = vpop.eup %914 }
 0x1f8   :  { %v698_v31 = vmul.f32 0.5, %v915_v29  ;;  %v699_v35 = vadd.f32 0.5, %v695_v28 }
 0x1f9   :  { %v917_v32 = vpop.eup %916 }
 0x1fa   :  { %v919_v33 = vpop.eup %918  ;;  %v712_v34 = vmul.f32 %v917_v32, %v700_v30  ;;  %v702_v39 = vadd.f32 0.5, %v698_v31 }
 0x1fb   :  { %v921_v36 = vpop.eup %920  ;;  %v697_v37 = vmul.f32 0.5, %v919_v33 }
 0x1fc   :  { %716 = vst [vmem:[%s1186_s5 + $0x8] sm:$0xff] %v712_v34  ;;  %v711_v38 = vmul.f32 %v921_v36, %v699_v35 }
 0x1fd   :  { %v923_v40 = vpop.eup %922  ;;  %v701_v42 = vadd.f32 0.5, %v697_v37 }
 0x1fe   :  { %715 = vst [vmem:[%s1186_s5] sm:$0xff] %v711_v38  ;;  %v714_v41 = vmul.f32 %v923_v40, %v702_v39 }
 0x1ff   :  { %v925_v43 = vpop.eup %924 }
 0x200   :  { %718 = vst [vmem:[%s1186_s5 + $0x18] sm:$0xff] %v714_v41  ;;  %v713_v44 = vmul.f32 %v925_v43, %v701_v42 }
 0x202   :  { %717 = vst [vmem:[%s1186_s5 + $0x10] sm:$0xff] %v713_v44 }

</bundles_post_ra>
